<compile_context>
chip_gen: v6e
topology: v6e:2x2x1
jax: 0.10.0
libtpu: 0.0.40
codegen_flags: <defaults>
</compile_context>

<pallas_src>
import jax
import jax.numpy as jnp
from jax import lax
from jax.experimental import pallas as pl
from jax.experimental.pallas import tpu as pltpu

N_LAYERS = 2            # params['n_layers']
IN_FEATURES = 60        # 6 * 5 * 2
HIDDEN = 16
OUT_FEATURES = 2
NEG_SLOPE = 0.01        # F.leaky_relu default
DEFAULT_TB = 4096       # rows per grid step (multiple of 128)


def _round_up(n, m):
    return ((n + m - 1) // m) * m


def _leaky(y):
    # leaky_relu(y) == max(y, slope*y) for 0 <= slope <= 1.
    return jnp.maximum(y, NEG_SLOPE * y)


def threshold_kernel(x_ref, *refs):
    # refs = (w0T, b0, w1T, b1, ..., wLT, bL, out_ref)
    # wT: (out, in) pre-transposed weights, b: (out, 1) biases.
    out_ref = refs[-1]
    wb = refs[:-1]

    # int -> float cast on-chip (VPU); avoids an extra HBM pass in the wrapper.
    x = x_ref[...].astype(jnp.float32)                       # (TB, 60)

    # Layer 0, feature-major result: (H, TB) = W0^T @ x^T, expressed as the
    # standard "contract last dims" (A @ B^T) pattern -> no materialized
    # transpose of the big activation tile.
    y = lax.dot_general(
        wb[0][...], x,
        dimension_numbers=(((1,), (1,)), ((), ())),
        preferred_element_type=jnp.float32)                  # (H, TB)
    y = _leaky(y + wb[1][...])                               # bias (H,1) bcast over lanes

    # Remaining layers: plain (out,in) @ (in, TB) matmuls, big operand stays
    # lane-dense the whole way.
    n_linear = len(wb) // 2
    for l in range(1, n_linear):
        y = jnp.dot(wb[2 * l][...], y,
                    preferred_element_type=jnp.float32) + wb[2 * l + 1][...]
        y = _leaky(y)

    out_ref[...] = y.astype(out_ref.dtype)                   # (OUT, TB), lane-dense store


def make_params(seed: int = 0):
    """Deterministic PyTorch-style (uniform +/- 1/sqrt(fan_in)) init.

    Returns a list of (w, b) with w: (in, out), b: (1, out) — same convention
    as the original nn.Linear-based module (after w = weight.T).
    """
    dims = [IN_FEATURES] + [HIDDEN] * (N_LAYERS + 1) + [OUT_FEATURES]
    key = jax.random.PRNGKey(seed)
    params = []
    for i in range(len(dims) - 1):
        fan_in, fan_out = dims[i], dims[i + 1]
        key, kw, kb = jax.random.split(key, 3)
        bound = 1.0 / (fan_in ** 0.5)
        w = jax.random.uniform(kw, (fan_in, fan_out), jnp.float32, -bound, bound)
        b = jax.random.uniform(kb, (1, fan_out), jnp.float32, -bound, bound)
        params.append((w, b))
    return params


def threshold_forward(x, params, tb: int = DEFAULT_TB):
    """x: (B, 6, 5, 2) int array (Wordle board state). Returns (B, 2) float32."""
    B = x.shape[0]
    y = x.reshape(B, -1)                                     # (B, 60) int32 — no cast here
    assert y.shape[1] == IN_FEATURES

    # Batch tile: multiple of 128 (lane dim of the transposed output block).
    TB = min(_round_up(tb, 128), _round_up(B, 128))
    B_pad = _round_up(B, TB)
    if B_pad != B:
        y = jnp.pad(y, ((0, B_pad - B), (0, 0)))             # keep all blocks in-bounds

    # Pre-transpose weights to (out, in) and biases to (out, 1) — tiny arrays,
    # done once at trace time; they stay VMEM-resident inside the kernel.
    flat_params = []
    for (w, b) in params:
        flat_params.extend([jnp.asarray(w).T, jnp.asarray(b).reshape(-1, 1)])

    in_specs = [pl.BlockSpec((TB, IN_FEATURES), lambda i: (i, 0))]
    for p in flat_params:
        # Constant index_map -> block never changes -> no re-DMA across tiles.
        in_specs.append(pl.BlockSpec(p.shape, lambda i: (0, 0)))

    out_t = pl.pallas_call(
        threshold_kernel,
        out_shape=jax.ShapeDtypeStruct((OUT_FEATURES, B_pad), jnp.float32),
        grid=(B_pad // TB,),
        in_specs=in_specs,
        out_specs=pl.BlockSpec((OUT_FEATURES, TB), lambda i: (0, i)),
        compiler_params=pltpu.CompilerParams(
            dimension_semantics=("parallel",)),               # 2nd TC on v7x; no-op elsewhere
    )(y, *flat_params)

    return out_t[:, :B].T                                     # (B, 2)


def threshold_reference(x, params):
    B = x.shape[0]
    y = x.reshape(B, -1).astype(jnp.float32)
    for (w, b) in params:
        y = _leaky(y @ w + b)
    return y


if __name__ == "__main__":
    params = make_params(seed=0)

    # Small test: batch=2, Wordle-like state (B, rows=6, cols=5, slots=2).
    key = jax.random.PRNGKey(0)
    B = 2
    x = jax.random.randint(key, (B, 6, 5, 2), 0, 28, dtype=jnp.int32)
    out = jax.block_until_ready(threshold_forward(x, params))
    ref = threshold_reference(x, params)
    assert out.shape == (B, OUT_FEATURES)
    assert jnp.allclose(out, ref, rtol=1e-3, atol=1e-3), (out, ref)

    # Multi-tile + padding path: B not a multiple of the tile size.
    key2 = jax.random.PRNGKey(1)
    B2 = 300
    x2 = jax.random.randint(key2, (B2, 6, 5, 2), 0, 28, dtype=jnp.int32)
    out2 = jax.block_until_ready(threshold_forward(x2, params, tb=128))
    ref2 = threshold_reference(x2, params)
    assert out2.shape == (B2, OUT_FEATURES)
    assert jnp.allclose(out2, ref2, rtol=1e-3, atol=1e-3)

    print("KERNEL_OK")
</pallas_src>

<mosaic_0001>
module attributes {stable_mosaic.version = 11 : i64} {
  func.func @threshold_kernel(%arg0: i32, %arg1: memref<128x60xi32, #tpu.memory_space<vmem>>, %arg2: memref<16x60xf32, #tpu.memory_space<vmem>>, %arg3: memref<16x1xf32, #tpu.memory_space<vmem>>, %arg4: memref<16x16xf32, #tpu.memory_space<vmem>>, %arg5: memref<16x1xf32, #tpu.memory_space<vmem>>, %arg6: memref<16x16xf32, #tpu.memory_space<vmem>>, %arg7: memref<16x1xf32, #tpu.memory_space<vmem>>, %arg8: memref<2x16xf32, #tpu.memory_space<vmem>>, %arg9: memref<2x1xf32, #tpu.memory_space<vmem>>, %arg10: memref<2x128xf32, #tpu.memory_space<vmem>>) attributes {dimension_semantics = [#tpu.dimension_semantics<parallel>], iteration_bounds = array<i64: 1>, scalar_prefetch = 0 : i64, scratch_operands = 0 : i64, tpu.core_type = #tpu.core_type<tc>, window_params = [{transform_indices = @transform_0, window_bounds = array<i64: 128, 60>}, {pipeline_mode = #tpu.pipeline_mode<synchronous>, transform_indices = @transform_1, window_bounds = array<i64: 16, 60>}, {pipeline_mode = #tpu.pipeline_mode<synchronous>, transform_indices = @transform_2, window_bounds = array<i64: 16, 1>}, {pipeline_mode = #tpu.pipeline_mode<synchronous>, transform_indices = @transform_3, window_bounds = array<i64: 16, 16>}, {pipeline_mode = #tpu.pipeline_mode<synchronous>, transform_indices = @transform_4, window_bounds = array<i64: 16, 1>}, {pipeline_mode = #tpu.pipeline_mode<synchronous>, transform_indices = @transform_5, window_bounds = array<i64: 16, 16>}, {pipeline_mode = #tpu.pipeline_mode<synchronous>, transform_indices = @transform_6, window_bounds = array<i64: 16, 1>}, {pipeline_mode = #tpu.pipeline_mode<synchronous>, transform_indices = @transform_7, window_bounds = array<i64: 2, 16>}, {pipeline_mode = #tpu.pipeline_mode<synchronous>, transform_indices = @transform_8, window_bounds = array<i64: 2, 1>}, {transform_indices = @transform_9, window_bounds = array<i64: 2, 128>}]} {
    %c0 = arith.constant 0 : index
    %c0_0 = arith.constant 0 : index
    %0 = vector.load %arg1[%c0, %c0_0] : memref<128x60xi32, #tpu.memory_space<vmem>>, vector<128x60xi32>
    %1 = arith.sitofp %0 : vector<128x60xi32> to vector<128x60xf32>
    %c0_1 = arith.constant 0 : index
    %c0_2 = arith.constant 0 : index
    %2 = vector.load %arg2[%c0_1, %c0_2] : memref<16x60xf32, #tpu.memory_space<vmem>>, vector<16x60xf32>
    %cst = arith.constant dense<0.000000e+00> : vector<16x128xf32>
    %3 = tpu.matmul %2, %1, %cst {dimension_numbers = #tpu.dot_dimension_numbers<[1], [1], [0], [0], [0, 0, 1, 0], [], []>} : vector<16x60xf32>, vector<128x60xf32>, vector<16x128xf32> -> vector<16x128xf32>
    %c0_3 = arith.constant 0 : index
    %c0_4 = arith.constant 0 : index
    %4 = vector.load %arg3[%c0_3, %c0_4] : memref<16x1xf32, #tpu.memory_space<vmem>>, vector<16x1xf32>
    %5 = vector.broadcast %4 : vector<16x1xf32> to vector<16x128xf32>
    %6 = arith.addf %3, %5 : vector<16x128xf32>
    %cst_5 = arith.constant 0.00999999977 : f32
    %7 = vector.broadcast %cst_5 : f32 to vector<16x128xf32>
    %8 = arith.mulf %7, %6 : vector<16x128xf32>
    %9 = arith.maximumf %6, %8 : vector<16x128xf32>
    %c0_6 = arith.constant 0 : index
    %c0_7 = arith.constant 0 : index
    %10 = vector.load %arg4[%c0_6, %c0_7] : memref<16x16xf32, #tpu.memory_space<vmem>>, vector<16x16xf32>
    %cst_8 = arith.constant dense<0.000000e+00> : vector<16x128xf32>
    %11 = tpu.matmul %10, %9, %cst_8 {dimension_numbers = #tpu.dot_dimension_numbers<[1], [0], [0], [1], [0, 0, 1, 1], [], []>} : vector<16x16xf32>, vector<16x128xf32>, vector<16x128xf32> -> vector<16x128xf32>
    %c0_9 = arith.constant 0 : index
    %c0_10 = arith.constant 0 : index
    %12 = vector.load %arg5[%c0_9, %c0_10] : memref<16x1xf32, #tpu.memory_space<vmem>>, vector<16x1xf32>
    %13 = vector.broadcast %12 : vector<16x1xf32> to vector<16x128xf32>
    %14 = arith.addf %11, %13 : vector<16x128xf32>
    %cst_11 = arith.constant 0.00999999977 : f32
    %15 = vector.broadcast %cst_11 : f32 to vector<16x128xf32>
    %16 = arith.mulf %15, %14 : vector<16x128xf32>
    %17 = arith.maximumf %14, %16 : vector<16x128xf32>
    %c0_12 = arith.constant 0 : index
    %c0_13 = arith.constant 0 : index
    %18 = vector.load %arg6[%c0_12, %c0_13] : memref<16x16xf32, #tpu.memory_space<vmem>>, vector<16x16xf32>
    %cst_14 = arith.constant dense<0.000000e+00> : vector<16x128xf32>
    %19 = tpu.matmul %18, %17, %cst_14 {dimension_numbers = #tpu.dot_dimension_numbers<[1], [0], [0], [1], [0, 0, 1, 1], [], []>} : vector<16x16xf32>, vector<16x128xf32>, vector<16x128xf32> -> vector<16x128xf32>
    %c0_15 = arith.constant 0 : index
    %c0_16 = arith.constant 0 : index
    %20 = vector.load %arg7[%c0_15, %c0_16] : memref<16x1xf32, #tpu.memory_space<vmem>>, vector<16x1xf32>
    %21 = vector.broadcast %20 : vector<16x1xf32> to vector<16x128xf32>
    %22 = arith.addf %19, %21 : vector<16x128xf32>
    %cst_17 = arith.constant 0.00999999977 : f32
    %23 = vector.broadcast %cst_17 : f32 to vector<16x128xf32>
    %24 = arith.mulf %23, %22 : vector<16x128xf32>
    %25 = arith.maximumf %22, %24 : vector<16x128xf32>
    %c0_18 = arith.constant 0 : index
    %c0_19 = arith.constant 0 : index
    %26 = vector.load %arg8[%c0_18, %c0_19] : memref<2x16xf32, #tpu.memory_space<vmem>>, vector<2x16xf32>
    %cst_20 = arith.constant dense<0.000000e+00> : vector<2x128xf32>
    %27 = tpu.matmul %26, %25, %cst_20 {dimension_numbers = #tpu.dot_dimension_numbers<[1], [0], [0], [1], [0, 0, 1, 1], [], []>} : vector<2x16xf32>, vector<16x128xf32>, vector<2x128xf32> -> vector<2x128xf32>
    %c0_21 = arith.constant 0 : index
    %c0_22 = arith.constant 0 : index
    %28 = vector.load %arg9[%c0_21, %c0_22] : memref<2x1xf32, #tpu.memory_space<vmem>>, vector<2x1xf32>
    %29 = vector.broadcast %28 : vector<2x1xf32> to vector<2x128xf32>
    %30 = arith.addf %27, %29 : vector<2x128xf32>
    %cst_23 = arith.constant 0.00999999977 : f32
    %31 = vector.broadcast %cst_23 : f32 to vector<2x128xf32>
    %32 = arith.mulf %31, %30 : vector<2x128xf32>
    %33 = arith.maximumf %30, %32 : vector<2x128xf32>
    %c0_24 = arith.constant 0 : index
    %c0_25 = arith.constant 0 : index
    %34 = vector.load %arg10[%c0_24, %c0_25] : memref<2x128xf32, #tpu.memory_space<vmem>>, vector<2x128xf32>
    tpu.vector_store %arg10[%c0_24, %c0_25], %33 {strides = array<i32>} : memref<2x128xf32, #tpu.memory_space<vmem>>, vector<2x128xf32>,
    return
  }
  func.func @transform_0(%arg0: i32) -> (i32, i32) {
    %c0_i32 = arith.constant 0 : i32
    %c0_i32_0 = arith.constant 0 : i32
    return %arg0, %c0_i32 : i32, i32
  }
  func.func @transform_1(%arg0: i32) -> (i32, i32) {
    %c0_i32 = arith.constant 0 : i32
    %c0_i32_0 = arith.constant 0 : i32
    %c0_i32_1 = arith.constant 0 : i32
    return %c0_i32, %c0_i32_0 : i32, i32
  }
  func.func @transform_2(%arg0: i32) -> (i32, i32) {
    %c0_i32 = arith.constant 0 : i32
    %c0_i32_0 = arith.constant 0 : i32
    %c0_i32_1 = arith.constant 0 : i32
    return %c0_i32, %c0_i32_0 : i32, i32
  }
  func.func @transform_3(%arg0: i32) -> (i32, i32) {
    %c0_i32 = arith.constant 0 : i32
    %c0_i32_0 = arith.constant 0 : i32
    %c0_i32_1 = arith.constant 0 : i32
    return %c0_i32, %c0_i32_0 : i32, i32
  }
  func.func @transform_4(%arg0: i32) -> (i32, i32) {
    %c0_i32 = arith.constant 0 : i32
    %c0_i32_0 = arith.constant 0 : i32
    %c0_i32_1 = arith.constant 0 : i32
    return %c0_i32, %c0_i32_0 : i32, i32
  }
  func.func @transform_5(%arg0: i32) -> (i32, i32) {
    %c0_i32 = arith.constant 0 : i32
    %c0_i32_0 = arith.constant 0 : i32
    %c0_i32_1 = arith.constant 0 : i32
    return %c0_i32, %c0_i32_0 : i32, i32
  }
  func.func @transform_6(%arg0: i32) -> (i32, i32) {
    %c0_i32 = arith.constant 0 : i32
    %c0_i32_0 = arith.constant 0 : i32
    %c0_i32_1 = arith.constant 0 : i32
    return %c0_i32, %c0_i32_0 : i32, i32
  }
  func.func @transform_7(%arg0: i32) -> (i32, i32) {
    %c0_i32 = arith.constant 0 : i32
    %c0_i32_0 = arith.constant 0 : i32
    %c0_i32_1 = arith.constant 0 : i32
    return %c0_i32, %c0_i32_0 : i32, i32
  }
  func.func @transform_8(%arg0: i32) -> (i32, i32) {
    %c0_i32 = arith.constant 0 : i32
    %c0_i32_0 = arith.constant 0 : i32
    %c0_i32_1 = arith.constant 0 : i32
    return %c0_i32, %c0_i32_0 : i32, i32
  }
  func.func @transform_9(%arg0: i32) -> (i32, i32) {
    %c0_i32 = arith.constant 0 : i32
    %c0_i32_0 = arith.constant 0 : i32
    return %c0_i32, %arg0 : i32, i32
  }
}

</mosaic_0001>

<bundles_post_ra>
// kernel: tpu_custom_call.1
= control target key start
LH: loop header
LB: loop body
LE: loop exit
PB: predicated region body
PF: predicated region fallthrough
CT: control target
= control target key end

     0   :  { %vm79_vm0 = vcmask 490496   ;;  %v645_v4 = vmov 0   ;;  %s831_s0 = inlined_call_operand.vmem [shape: s32[128,60], index: 0, kind: input, shape index: {}]   ;;  %s832_s1 = inlined_call_operand.vmem [shape: f32[16,60], index: 1, kind: input, shape index: {}]   ;;  %s833_s2 = inlined_call_operand.vmem [shape: f32[16,1], index: 2, kind: input, shape index: {}]   ;;  %s834_s3 = inlined_call_operand.vmem [shape: f32[16,16], index: 3, kind: input, shape index: {}]   ;;  %s835_s4 = inlined_call_operand.vmem [shape: f32[16,1], index: 4, kind: input, shape index: {}]   ;;  %s836_s5 = inlined_call_operand.vmem [shape: f32[16,16], index: 5, kind: input, shape index: {}]   ;;  %s837_s6 = inlined_call_operand.vmem [shape: f32[16,1], index: 6, kind: input, shape index: {}]   ;;  %s838_s7 = inlined_call_operand.vmem [shape: f32[2,16], index: 7, kind: input, shape index: {}]   ;;  %s839_s8 = inlined_call_operand.vmem [shape: f32[2,1], index: 8, kind: input, shape index: {}]   ;;  %s840_s9 = inlined_call_operand.hbm [shape: f32[2,128], index: 9, kind: output, shape index: {}]  }
   0x1   :  { %v48_v0 = vld [vmem:[%s831_s0 + $0x78] sm:$0xff]  ;;  %v47_v1 = vld [vmem:[%s831_s0 + $0x70] sm:$0xff]  ;;  %621 = vset.pattern.permute.xlu0 %v645_v4  ;;  %622 = vset.pattern.permute.xlu1 %v645_v4  ;;  %v46_v5 = vld [vmem:[%s831_s0 + $0x68] sm:$0xff] }
   0x2   :  { %v64_v2 = vcvt.s32.f32 %v48_v0  ;;  %v63_v3 = vcvt.s32.f32 %v47_v1  ;;  %v62_v6 = vcvt.s32.f32 %v46_v5  ;;  %v65_v7 = vld [vmem:[%s832_s1] sm:$0xff]  ;;  %v68_v9 = vld [vmem:[%s833_s2 + $0x8] sm:$0xff] }
   0x3   :  { %v45_v8 = vld [vmem:[%s831_s0 + $0x60] sm:$0xff]  ;;  %593 = vmatprep.mubr.msk.f32.mxu0 %vm79_vm0, %v65_v7  ;;  %76 = vperm.xlu0 %621, %v68_v9  }
   0x4   :  { %561 = vmatprep.subr.msk.mxu0 %vm79_vm0, %v64_v2 }
   0x5   :  { %562 = vmatpush3.xpose.msk.msra.mxu0 %vm79_vm0, %v64_v2 }
   0x6   :  { %563 = vmatprep.subr.msk.mxu0 %vm79_vm0, %v63_v3 }
   0x7   :  { %14 = vsyncpa [#allocation3], 0  ;;  %v67_v10 = vld [vmem:[%s833_s2] sm:$0xff]  ;;  %v61_v11 = vcvt.s32.f32 %v45_v8  ;;  %v44_v12 = vld [vmem:[%s831_s0 + $0x58] sm:$0xff]  ;;  %vm227_vm1 = vcmask 130048   ;;  %v646_v2 = vmov 0.0  }
   0x8   :  { %71 = vperm.xlu0 %621, %v67_v10   ;;  %v316_v13 = vld [vmem:[%s837_s6 + $0x8] sm:$0xff]  ;;  %v60_v14 = vcvt.s32.f32 %v44_v12  ;;  %v43_v15 = vld [vmem:[%s831_s0 + $0x50] sm:$0xff]  ;;  %v413_v16 = vld [vmem:[%s839_s8] sm:$0x3]  ;;  %vm647_vm2 = vmmov 0   ;;  %s648_s17 = smov [#allocation2]  }
   0x9   :  { %564 = vmatpush3.xpose.msk.msra.mxu0 %vm79_vm0, %v63_v3  ;;  %v59_v17 = vcvt.s32.f32 %v43_v15  ;;  %v42_v18 = vld [vmem:[%s831_s0 + $0x48] sm:$0xff]  ;;  %v41_v20 = vld [vmem:[%s831_s0 + $0x40] sm:$0xff]  ;;  %v40_v22 = vld [vmem:[%s831_s0 + $0x38] sm:$0xff]  ;;  %s501_s18 = sshll.u32 %s648_s17, 4  ;;  %s502_s18 = int_to_ptr.vmem [resolvable:$true] %s501_s18 }
   0xa   :  { %565 = vmatprep.subr.msk.mxu0 %vm79_vm0, %v62_v6  ;;  %v58_v19 = vcvt.s32.f32 %v42_v18  ;;  %v57_v21 = vcvt.s32.f32 %v41_v20  ;;  %v56_v23 = vcvt.s32.f32 %v40_v22  ;;  %v39_v24 = vld [vmem:[%s831_s0 + $0x30] sm:$0xff]  ;;  %v38_v26 = vld [vmem:[%s831_s0 + $0x28] sm:$0xff]  ;;  %v37_v28 = vld [vmem:[%s831_s0 + $0x20] sm:$0xff]  ;;  %s623_s19 = scalar_lea.vmem %s502_s18, 32  ;;  %p628_p1 = scmp.lt.s32.totalorder %s502_s18, %s502_s18 }
   0xb   :  { %v55_v25 = vcvt.s32.f32 %v39_v24  ;;  %v54_v27 = vcvt.s32.f32 %v38_v26  ;;  %v53_v29 = vcvt.s32.f32 %v37_v28  ;;  %v36_v30 = vld [vmem:[%s831_s0 + $0x18] sm:$0xff]  ;;  %v35_v32 = vld [vmem:[%s831_s0 + $0x10] sm:$0xff]  ;;  %v34_v34 = vld [vmem:[%s831_s0 + $0x8] sm:$0xff]  ;;  %p624_p0 = scmp.ne.s32.totalorder %s502_s18, %s623_s19  ;;  %p629_p2 = scmp.lt.s32.totalorder %s623_s19, %s623_s19 }
   0xc   :  { %324 = vperm.xlu0 %621, %v316_v13   ;;  %v52_v31 = vcvt.s32.f32 %v36_v30  ;;  %v51_v33 = vcvt.s32.f32 %v35_v32  ;;  %v50_v35 = vcvt.s32.f32 %v34_v34  ;;  %v33_v36 = vld [vmem:[%s831_s0] sm:$0xff]  ;;  %v66_v38 = vld [vmem:[%s832_s1 + $0x8] sm:$0xff] }
   0xd   :  { %566 = vmatpush3.xpose.msk.msra.mxu0 %vm79_vm0, %v62_v6  ;;  %v49_v37 = vcvt.s32.f32 %v33_v36  ;;  %v213_v39 = vld [vmem:[%s834_s3] sm:$0xff]  ;;  %v216_v40 = vld [vmem:[%s835_s4 + $0x8] sm:$0xff]  ;;  %p630_p3 = por %p629_p2, %p628_p1 }
   0xe   :  { %567 = vmatprep.subr.msk.mxu0 %vm79_vm0, %v61_v11  ;;  %600 = vmatprep.mubr.msk.f32.mxu1 %vm227_vm1, %v213_v39  ;;  %v215_v41 = vld [vmem:[%s835_s4] sm:$0xff]  ;;  %v214_v53 = vld [vmem:[%s834_s3 + $0x8] sm:$0xff] }
   0xf   :  { %224 = vperm.xlu1 %622, %v216_v40   ;;  %v315_v42 = vld [vmem:[%s837_s6] sm:$0xff]  ;;  %v314_v1 = vld [vmem:[%s836_s5 + $0x8] sm:$0xff]  ;;  %p631_p4 = pnand %p630_p3, %p624_p0 }
  0x10   :  { %416 = vperm.xlu0 %621, %v413_v16   ;;  %v313_v54 = vld [vmem:[%s836_s5] sm:$0xff] }
  0x11   :  { %568 = vmatpush3.xpose.msk.msra.mxu0 %vm79_vm0, %v61_v11  ;;  %v412_v13 = vld [vmem:[%s838_s7] sm:$0x3] }
  0x12   :  { %569 = vmatprep.subr.msk.mxu0 %vm79_vm0, %v60_v14 }
  0x13   :  { %219 = vperm.xlu1 %622, %v215_v41  }
  0x15   :  { %570 = vmatpush3.xpose.msk.msra.mxu0 %vm79_vm0, %v60_v14 }
  0x16   :  { %571 = vmatprep.subr.msk.mxu0 %vm79_vm0, %v59_v17 }
  0x17   :  { %319 = vperm.xlu1 %622, %v315_v42  }
  0x19   :  { %572 = vmatpush3.xpose.msk.msra.mxu0 %vm79_vm0, %v59_v17 }
  0x1a   :  { %573 = vmatprep.subr.msk.mxu0 %vm79_vm0, %v58_v19 }
  0x1d   :  { %574 = vmatpush3.xpose.msk.msra.mxu0 %vm79_vm0, %v58_v19 }
  0x1e   :  { %575 = vmatprep.subr.msk.mxu0 %vm79_vm0, %v57_v21 }
  0x21   :  { %576 = vmatpush3.xpose.msk.msra.mxu0 %vm79_vm0, %v57_v21 }
  0x22   :  { %577 = vmatprep.subr.msk.mxu0 %vm79_vm0, %v56_v23 }
  0x25   :  { %578 = vmatpush3.xpose.msk.msra.mxu0 %vm79_vm0, %v56_v23 }
  0x26   :  { %579 = vmatprep.subr.msk.mxu0 %vm79_vm0, %v55_v25 }
  0x29   :  { %580 = vmatpush3.xpose.msk.msra.mxu0 %vm79_vm0, %v55_v25 }
  0x2a   :  { %581 = vmatprep.subr.msk.mxu0 %vm79_vm0, %v54_v27 }
  0x2d   :  { %582 = vmatpush3.xpose.msk.msra.mxu0 %vm79_vm0, %v54_v27 }
  0x2e   :  { %583 = vmatprep.subr.msk.mxu0 %vm79_vm0, %v53_v29 }
  0x31   :  { %584 = vmatpush3.xpose.msk.msra.mxu0 %vm79_vm0, %v53_v29 }
  0x32   :  { %585 = vmatprep.subr.msk.mxu0 %vm79_vm0, %v52_v31 }
  0x35   :  { %586 = vmatpush3.xpose.msk.msra.mxu0 %vm79_vm0, %v52_v31 }
  0x36   :  { %587 = vmatprep.subr.msk.mxu0 %vm79_vm0, %v51_v33 }
  0x39   :  { %588 = vmatpush3.xpose.msk.msra.mxu0 %vm79_vm0, %v51_v33 }
  0x3a   :  { %589 = vmatprep.subr.msk.mxu0 %vm79_vm0, %v50_v35 }
  0x3d   :  { %590 = vmatpush3.xpose.msk.msra.mxu0 %vm79_vm0, %v50_v35 }
  0x3e   :  { %591 = vmatprep.subr.msk.mxu0 %vm79_vm0, %v49_v37 }
  0x41   :  { %592 = vmatpush3.xpose.msk.msra.mxu0 %vm79_vm0, %v49_v37 }
  0x44   :  { %594 = vmatmul.mubr.msk.f32.vlgmr.msra.gmra.mxu0 %vm79_vm0, %v66_v38 }
  0x7e   :  { %v77_v43 = vpop.permute.xlu0 %76 }
  0x83   :  { %v72_v46 = vpop.permute.xlu0 %71 }
  0x87   :  { %v325_v3 = vpop.permute.xlu0 %324 }
  0x8a   :  { %v225_v55 = vpop.permute.xlu1 %224 }
  0x8b   :  { %v417_v14 = vpop.permute.xlu0 %416 }
  0x8e   :  { %v220_v58 = vpop.permute.xlu1 %219 }
  0x92   :  { %v320_v6 = vpop.permute.xlu1 %319 }
 0x104   :  { %v595_v44 = vpop.f32.mrf.mxu0 }
 0x105   :  { %v206_v45 = vadd.f32 %v595_v44, %v77_v43 }
 0x106   :  { %v200_v47 = vpop.f32.mrf.mxu0 }
 0x107   :  { %v210_v48 = vmul.f32 0.01, %v206_v45  ;;  %v201_v49 = vadd.f32 %v200_v47, %v72_v46 }
 0x109   :  { %v209_v50 = vmul.f32 0.01, %v201_v49  ;;  %v212_v51 = vmax.f32 %v206_v45, %v210_v48 }
 0x10b   :  { %v211_v52 = vmax.f32 %v201_v49, %v209_v50  ;;  %596 = vmatprep.subr.mxu1 %v212_v51 }
 0x10c   :  { %597 = vmatpush3.msra.mxu1 %v212_v51 }
 0x10d   :  { %598 = vmatprep.subr.mxu1 %v211_v52 }
 0x10e   :  { %599 = vmatpush3.msra.mxu1 %v211_v52 }
 0x10f   :  { %601 = vmatmul.mubr.msk.f32.vlgmr.msra.gmra.mxu1 %vm227_vm1, %v214_v53 }
 0x110   :  { %607 = vmatprep.mubr.msk.f32.mxu1 %vm227_vm1, %v313_v54 }
 0x1cf   :  { %v602_v56 = vpop.f32.mrf.mxu1 }
 0x1d0   :  { %v306_v57 = vadd.f32 %v602_v56, %v225_v55 }
 0x1d1   :  { %v300_v59 = vpop.f32.mrf.mxu1 }
 0x1d2   :  { %v310_v60 = vmul.f32 0.01, %v306_v57  ;;  %v301_v61 = vadd.f32 %v300_v59, %v220_v58 }
 0x1d4   :  { %v312_v62 = vmax.f32 %v306_v57, %v310_v60  ;;  %v309_v63 = vmul.f32 0.01, %v301_v61 }
 0x1d6   :  { %v311_v0 = vmax.f32 %v301_v61, %v309_v63  ;;  %603 = vmatprep.subr.mxu1 %v312_v62 }
 0x1d7   :  { %604 = vmatpush3.msra.mxu1 %v312_v62 }
 0x1d8   :  { %605 = vmatprep.subr.mxu1 %v311_v0 }
 0x1d9   :  { %606 = vmatpush3.msra.mxu1 %v311_v0 }
 0x1da   :  { %608 = vmatmul.mubr.msk.f32.vlgmr.msra.gmra.mxu1 %vm227_vm1, %v314_v1  ;;  %610 = vmatprep.subr.mxu1 %v646_v2 }
 0x1db   :  { %614 = vmatprep.mubr.msk.f32.mxu1 %vm647_vm2, %v646_v2 }
 0x29a   :  { %v609_v4 = vpop.f32.mrf.mxu1 }
 0x29b   :  { %v405_v5 = vadd.f32 %v609_v4, %v325_v3 }
 0x29c   :  { %v399_v7 = vpop.f32.mrf.mxu1 }
 0x29d   :  { %v409_v8 = vmul.f32 0.01, %v405_v5  ;;  %v400_v9 = vadd.f32 %v399_v7, %v320_v6 }
 0x29f   :  { %v411_v10 = vmax.f32 %v405_v5, %v409_v8  ;;  %v408_v11 = vmul.f32 0.01, %v400_v9 }
 0x2a1   :  { %v410_v12 = vmax.f32 %v400_v9, %v408_v11  ;;  %611 = vmatpush3.msra.mxu1 %v411_v10 }
 0x2a2   :  { %612 = vmatprep.subr.mxu1 %v646_v2 }
 0x2a3   :  { %613 = vmatpush3.msra.mxu1 %v410_v12 }
 0x2a4   :  { %615 = vmatmul.mubr.msk.f32.vlgmr.msra.gmra.mxu1 %vm227_vm1, %v412_v13 }
 0x364   :  { %v488_v15 = vpop.f32.mrf.mxu1 }
 0x365   :  { %v489_v16 = vadd.f32 %v488_v15, %v417_v14 }
 0x366   :  { %v616_v17 = vpop.f32.mrf.mxu1 }
 0x367   :  { %v492_v18 = vmul.f32 0.01, %v489_v16 }
 0x369   :  { %v493_v19 = vmax.f32 %v489_v16, %v492_v18 }
 0x36b   :  { %494 = vst [vmem:[#allocation2] sm:$0x3] %v493_v19 }
 0x36c   :  { %634 = shalt.err (!%p631_p4)
}
 0x36d   :  { %504 = dma.vmem_to_hbm [thread:$0]  %s502_s18, 32, %s840_s9, [#allocation3]  }
 0x36e   :  { %643 = dma.done.wait [#allocation3], 32  }
 0x36f   :  { %644 = vsyncadd [#allocation3], 4294967264 }
 0x370   :  { %508 = vsyncpa [#allocation3], 1 }

</bundles_post_ra>
